<compile_context>
chip_gen: v5e
topology: v5e:2x2
jax: 0.10.0
libtpu: 0.0.40
codegen_flags: <defaults>
</compile_context>

<pallas_src>
import functools

import jax
import jax.numpy as jnp
from jax.experimental import pallas as pl
from jax.experimental.pallas import tpu as pltpu


_VMEM = pl.BlockSpec(memory_space=pltpu.MemorySpace.VMEM)

# Below this node count a whole GAT level runs as ONE un-gridded pallas_call:
# at small N the per-call launch/pipeline overhead dominates the compute.
_FUSED_N_MAX = 128

_TILE_MENU = (1024, 512, 256, 128, 64, 32, 16, 8)


# ----------------------------------------------------------------------------
# Generation-aware VMEM budgeting
# ----------------------------------------------------------------------------
@functools.lru_cache(maxsize=None)
def _vmem_capacity_bytes():
    """Physical VMEM of the attached TPU (64 MiB conservative fallback)."""
    try:
        info = pltpu.get_tpu_info()
        cap = getattr(info, "vmem_capacity_bytes", None)
        if cap:
            return int(cap)
    except Exception:
        pass
    return 64 * 1024 * 1024  # v7x per-core size == safe lower bound


def _vmem_budget_bytes():
    # keep ~half of physical for double-buffering slack / compiler scratch
    return max(8 << 20, min(_vmem_capacity_bytes() // 2, 64 << 20))


def _vmem_limit(est_bytes):
    """Scoped-VMEM limit derived from the actual block sizes."""
    hi = max(24 << 20, _vmem_capacity_bytes() - (4 << 20))
    return int(min(hi, max(2 * est_bytes, 16 << 20)))


def _gat_vmem_estimate(n, h, tq, tk, with_att):
    b = 2 * (tk * h * 2)                  # Wh key tile (bf16), double-buffered
    b += 2 * (tq * 4 + tk * 4)            # f_src column / f_dst row tiles
    b += 2 * (tq * tk * 2)                # adjacency mask tile (bf16)
    b += 2 * (h * 4 + 4)                  # pool-head params
    b += 2 * (tq * h * 4 + tq * 4)        # out / score output tiles
    if with_att:
        b += 2 * (tq * n * 4)             # attention rows (final up-GAT only)
    b += tq * h * 4 + 2 * tq * 4          # online-softmax scratch (acc, m, l)
    b += 6 * tq * tk * 4                  # live f32 temporaries (e / logits / p)
    return b


def _choose_gat_tiles(n, h, with_att, menu):
    """Largest (tq, tk) from the menu whose VMEM footprint fits the budget."""
    budget = _vmem_budget_bytes()
    if with_att:
        for tq in menu:
            if _gat_vmem_estimate(n, h, tq, n, True) <= budget:
                return tq, n
        return menu[-1], n
    for tq in menu:               # prefer big tq: Wh key stream is re-read n/tq times
        for tk in menu:
            if _gat_vmem_estimate(n, h, tq, tk, False) <= budget:
                return tq, tk
    return menu[-1], menu[-1]


# ----------------------------------------------------------------------------
# Pallas kernels
# ----------------------------------------------------------------------------
def _gat_fused_kernel(*refs, alpha, with_pool, with_att):
    """Whole GAT level in one call (small N): GAT + pool score head + A^2 coarsen."""
    x_ref, adj_ref, w_ref, a2_ref = refs[:4]
    i = 4
    if with_pool:
        wp_ref, bp_ref = refs[i], refs[i + 1]
        i += 2
    out_ref = refs[i]
    i += 1
    if with_pool:
        score_ref, coars_ref = refs[i], refs[i + 1]
        i += 2
    if with_att:
        att_ref = refs[i]

    # tiny-K contractions: keep f32 MXU operands (bf16 packing costs more than it
    # saves at F,H <= 128); only the K=N PV matmul below uses bf16.
    wh = jnp.dot(x_ref[...], w_ref[...], preferred_element_type=jnp.float32)  # (N,H)
    f = jnp.dot(wh, a2_ref[...], preferred_element_type=jnp.float32)          # (N,2)
    e = f[:, 0:1] + f[:, 1:2].T                                               # (N,N)
    e = jnp.where(e > 0, e, alpha * e)                                        # LeakyReLU
    adj = adj_ref[...]                                                        # bf16 mask
    logits = jnp.where(adj > 0, e, jnp.float32(-9e15))
    m = jnp.max(logits, axis=-1, keepdims=True)
    p = jnp.exp(logits - m)
    inv = pl.reciprocal(jnp.sum(p, axis=-1, keepdims=True), approx=True)      # EUP slot
    att = p * inv
    hp = jnp.dot(att.astype(jnp.bfloat16), wh.astype(jnp.bfloat16),
                 preferred_element_type=jnp.float32)
    # TODO(synk): use expm1 for the negative ELU branch once guaranteed in Mosaic.
    out = jnp.where(hp > 0, hp, jnp.exp(jnp.minimum(hp, 0.0)) - 1.0)          # ELU
    out_ref[...] = out

    if with_pool:
        y = jnp.dot(out, wp_ref[...], preferred_element_type=jnp.float32) + bp_ref[...]
        score_ref[...] = 1.0 / (1.0 + jnp.exp(-y))                            # sigmoid
        u = (adj > 0).astype(jnp.bfloat16)          # gPool A^2 coarsening fused here
        u2 = jnp.dot(u, u, preferred_element_type=jnp.float32)
        coars_ref[...] = (u2 > 0).astype(jnp.float32)

    if with_att:
        att_ref[...] = att


def _gat_precompute_kernel(x_ref, w_ref, a2_ref, wh_ref, f_ref):
    """Hoisted key-side work, run ONCE per layer: Wh = x@W, f = Wh@[a_src|a_dst].

    Wh is emitted directly as bf16 (its only consumer is the bf16 PV matmul),
    halving the per-row-block DMA stream; f stays f32 for the softmax logits.
    """
    wh = jnp.dot(x_ref[...], w_ref[...], preferred_element_type=jnp.float32)
    wh_ref[...] = wh.astype(wh_ref.dtype)
    f_ref[...] = jnp.dot(wh, a2_ref[...], preferred_element_type=jnp.float32)


def _gat_rows_kernel(*refs, alpha, with_pool, with_att):
    """Row x key blocked GAT with an online-softmax accumulator.

    grid = (row blocks ["parallel"], key blocks ["arbitrary"]).  Key-side work is
    hoisted into _gat_precompute_kernel, so live VMEM here is bounded by the
    (tq,tk) tiles and independent of N (except the optional att rows, which
    force a single key block).
    """
    whk_ref, fsrc_ref, fdst_ref, adj_ref = refs[:4]
    i = 4
    if with_pool:
        wp_ref, bp_ref = refs[i], refs[i + 1]
        i += 2
    out_ref = refs[i]
    i += 1
    if with_pool:
        score_ref = refs[i]
        i += 1
    if with_att:
        att_ref = refs[i]
        i += 1
    m_sc, l_sc, acc_sc = refs[i], refs[i + 1], refs[i + 2]

    k = pl.program_id(1)

    @pl.when(k == 0)
    def _():
        m_sc[...] = jnp.full(m_sc.shape, -jnp.inf, m_sc.dtype)
        l_sc[...] = jnp.zeros(l_sc.shape, l_sc.dtype)
        acc_sc[...] = jnp.zeros(acc_sc.shape, acc_sc.dtype)

    e = fsrc_ref[...] + fdst_ref[...]                 # (tq,1)+(1,tk) -> (tq,tk)
    e = jnp.where(e > 0, e, alpha * e)                # LeakyReLU (f32 VPU)
    logits = jnp.where(adj_ref[...] > 0, e, jnp.float32(-9e15))

    m_prev = m_sc[...]
    m_new = jnp.maximum(m_prev, jnp.max(logits, axis=-1, keepdims=True))
    scale = jnp.exp(m_prev - m_new)
    p = jnp.exp(logits - m_new)
    l_sc[...] = scale * l_sc[...] + jnp.sum(p, axis=-1, keepdims=True)
    acc_sc[...] = scale * acc_sc[...] + jnp.dot(
        p.astype(jnp.bfloat16), whk_ref[...], preferred_element_type=jnp.float32)
    m_sc[...] = m_new

    @pl.when(k == pl.num_programs(1) - 1)
    def _():
        inv = pl.reciprocal(l_sc[...], approx=True)   # EUP slot
        hp = acc_sc[...] * inv
        out = jnp.where(hp > 0, hp, jnp.exp(jnp.minimum(hp, 0.0)) - 1.0)   # ELU
        out_ref[...] = out
        if with_pool:
            y = jnp.dot(out, wp_ref[...], preferred_element_type=jnp.float32) + bp_ref[...]
            score_ref[...] = 1.0 / (1.0 + jnp.exp(-y))
        if with_att:
            att_ref[...] = p * inv      # with_att forces a single key block


def _coarsen_rows_kernel(adj_rows_ref, adj_full_ref, out_ref):
    """gPool coarsening, row-tiled: out_rows = (binarize(A_rows) @ binarize(A) != 0)."""
    u_rows = (adj_rows_ref[...] > 0).astype(jnp.bfloat16)
    u_full = (adj_full_ref[...] > 0).astype(jnp.bfloat16)
    u2 = jnp.dot(u_rows, u_full, preferred_element_type=jnp.float32)
    out_ref[...] = (u2 > 0).astype(jnp.float32)


def _linear_sigmoid_kernel(x_ref, w_ref, b_ref, o_ref):
    # tiny-K / narrow-output contraction: keep f32 MXU operands (v5e review note)
    y = jnp.dot(x_ref[...], w_ref[...], preferred_element_type=jnp.float32) + b_ref[...]
    o_ref[...] = 1.0 / (1.0 + jnp.exp(-y))


# ----------------------------------------------------------------------------
# Kernel wrappers
# ----------------------------------------------------------------------------
def gat_layer(gp, x, adj, *, pool_params=None, return_att=False,
              tile_q=None, tile_k=None):
    """One GAT layer.  Returns (out, scores, att, un_g).

    scores / un_g are only produced when a gPool head is fused in;
    att only when return_att.
    """
    n = x.shape[0]
    menu = [t for t in _TILE_MENU if t <= n and n % t == 0]
    if n <= _FUSED_N_MAX or not menu:
        # TODO(synk): pad N up to a multiple of 8/128 instead of falling back to the
        # fused whole-graph kernel when N has no power-of-two row-tile divisor.
        return _gat_fused(gp, x, adj, pool_params, return_att)
    return _gat_blocked(gp, x, adj, pool_params, return_att, tile_q, tile_k, menu)


def _gat_fused(gp, x, adj, pool_params, return_att):
    n, f = x.shape
    h = gp["W"].shape[1]
    with_pool = pool_params is not None

    kernel = functools.partial(_gat_fused_kernel, alpha=gp["alpha"],
                               with_pool=with_pool, with_att=return_att)
    inputs = [x.astype(jnp.float32), adj.astype(jnp.bfloat16), gp["W"], gp["a2"]]
    out_shapes = [jax.ShapeDtypeStruct((n, h), jnp.float32)]
    if with_pool:
        inputs += [pool_params["W"], pool_params["b"].reshape(1, 1)]
        out_shapes += [jax.ShapeDtypeStruct((n, 1), jnp.float32),
                       jax.ShapeDtypeStruct((n, n), jnp.float32)]
    if return_att:
        # TODO(synk): emit att as bf16 if downstream tolerance allows (halves writeback).
        out_shapes.append(jax.ShapeDtypeStruct((n, n), jnp.float32))

    flops = 2 * n * f * h + 4 * n * h + 2 * n * n * h + 6 * n * n
    trans = n * n
    nbytes = 4 * (n * f + f * h + 2 * h + n * h) + 2 * n * n
    if with_pool:
        flops += 2 * n * h + 2 * n * n * n
        trans += n
        nbytes += 4 * (h + 1 + n + n * n)
    if return_att:
        nbytes += 4 * n * n
    est_vmem = 4 * (6 * n * n + 2 * n * h + n * f + f * h)

    outs = pl.pallas_call(
        kernel,
        out_shape=tuple(out_shapes),
        in_specs=[_VMEM] * len(inputs),
        out_specs=tuple([_VMEM] * len(out_shapes)),
        compiler_params=pltpu.CompilerParams(vmem_limit_bytes=_vmem_limit(est_vmem)),
        cost_estimate=pl.CostEstimate(flops=int(flops), transcendentals=int(trans),
                                      bytes_accessed=int(nbytes)),
    )(*inputs)

    out = outs[0]
    scores = att = un_g = None
    i = 1
    if with_pool:
        scores, un_g = outs[i], outs[i + 1]
        i += 2
    if return_att:
        att = outs[i]
    return out, scores, att, un_g


def _gat_blocked(gp, x, adj, pool_params, return_att, tile_q, tile_k, menu):
    n, f = x.shape
    h = gp["W"].shape[1]
    with_pool = pool_params is not None

    tq_auto, tk_auto = _choose_gat_tiles(n, h, return_att, menu)
    tq = tile_q if tile_q is not None else tq_auto
    tk = n if return_att else (tile_k if tile_k is not None else tk_auto)
    assert n % tq == 0 and n % tk == 0
    nq, nk = n // tq, n // tk

    # --- (1) hoisted key-side precompute: once per layer -----------------------
    pre_bytes = 4 * (n * f + f * h + 2 * h + 2 * n) + 2 * n * h
    wh_bf16, fvec = pl.pallas_call(
        _gat_precompute_kernel,
        out_shape=(jax.ShapeDtypeStruct((n, h), jnp.bfloat16),
                   jax.ShapeDtypeStruct((n, 2), jnp.float32)),
        grid=(nq,),
        in_specs=[pl.BlockSpec((tq, f), lambda i: (i, 0)),
                  pl.BlockSpec((f, h), lambda i: (0, 0)),
                  pl.BlockSpec((h, 2), lambda i: (0, 0))],
        out_specs=(pl.BlockSpec((tq, h), lambda i: (i, 0)),
                   pl.BlockSpec((tq, 2), lambda i: (i, 0))),
        compiler_params=pltpu.CompilerParams(
            dimension_semantics=("parallel",),
            vmem_limit_bytes=_vmem_limit(8 * tq * (f + h + 2) + 4 * f * h)),
        cost_estimate=pl.CostEstimate(flops=int(2 * n * f * h + 4 * n * h),
                                      transcendentals=0,
                                      bytes_accessed=int(pre_bytes)),
    )(x.astype(jnp.float32), gp["W"], gp["a2"])

    f_src = fvec[:, 0:1]                 # (N,1) per-query attention bias
    f_dst_row = fvec[:, 1:2].T           # (1,N) lane-dense key bias (one relayout/layer)
    adj_bf16 = adj.astype(jnp.bfloat16)  # mask-only operand -> half the DMA bytes

    # --- (2) row x key blocked GAT with online softmax --------------------------
    kernel = functools.partial(_gat_rows_kernel, alpha=gp["alpha"],
                               with_pool=with_pool, with_att=return_att)
    in_specs = [
        pl.BlockSpec((tk, h), lambda i, k: (k, 0)),   # Wh key tile (bf16)
        pl.BlockSpec((tq, 1), lambda i, k: (i, 0)),   # f_src
        pl.BlockSpec((1, tk), lambda i, k: (0, k)),   # f_dst (lane-dense row)
        pl.BlockSpec((tq, tk), lambda i, k: (i, k)),  # adjacency mask tile (bf16)
    ]
    inputs = [wh_bf16, f_src, f_dst_row, adj_bf16]
    out_shapes = [jax.ShapeDtypeStruct((n, h), jnp.float32)]
    out_specs = [pl.BlockSpec((tq, h), lambda i, k: (i, 0))]
    if with_pool:
        # NOTE: after hoisting W/a2, the only constant-index operands left are the
        # tiny (H,1)/(1,1) pool params, so pipeline_mode=Buffered(1) would save
        # nothing measurable; skipped on purpose.
        in_specs += [pl.BlockSpec((h, 1), lambda i, k: (0, 0)),
                     pl.BlockSpec((1, 1), lambda i, k: (0, 0))]
        inputs += [pool_params["W"], pool_params["b"].reshape(1, 1)]
        out_shapes.append(jax.ShapeDtypeStruct((n, 1), jnp.float32))
        out_specs.append(pl.BlockSpec((tq, 1), lambda i, k: (i, 0)))
    if return_att:
        # TODO(synk): emit att as bf16 if downstream tolerance allows.
        out_shapes.append(jax.ShapeDtypeStruct((n, n), jnp.float32))
        out_specs.append(pl.BlockSpec((tq, n), lambda i, k: (i, 0)))

    est = _gat_vmem_estimate(n, h, tq, tk, return_att)
    flops = 2 * n * n * h + 6 * n * n + (2 * n * h if with_pool else 0)
    trans = n * n + n * nk + (n if with_pool else 0)
    nbytes = (2 * n * h * nq              # Wh key stream (bf16), re-read per row block
              + 2 * n * n                 # adjacency (bf16)
              + 4 * n * (1 + nq)          # f_src + f_dst stream
              + 4 * n * h + (4 * n if with_pool else 0)
              + (4 * n * n if return_att else 0))

    outs = pl.pallas_call(
        kernel,
        out_shape=tuple(out_shapes),
        grid=(nq, nk),
        in_specs=in_specs,
        out_specs=tuple(out_specs),
        scratch_shapes=[pltpu.VMEM((tq, 1), jnp.float32),   # running max
                        pltpu.VMEM((tq, 1), jnp.float32),   # running denom
                        pltpu.VMEM((tq, h), jnp.float32)],  # running PV accumulator
        compiler_params=pltpu.CompilerParams(
            dimension_semantics=("parallel", "arbitrary"),
            vmem_limit_bytes=_vmem_limit(est)),
        cost_estimate=pl.CostEstimate(flops=int(flops), transcendentals=int(trans),
                                      bytes_accessed=int(nbytes)),
    )(*inputs)

    out = outs[0]
    scores = att = un_g = None
    i = 1
    if with_pool:
        scores = outs[i]
        i += 1
    if return_att:
        att = outs[i]
    if with_pool:
        un_g = coarsen_adj(adj_bf16, menu)
    return out, scores, att, un_g


def coarsen_adj(adj_bf16, menu=None):
    """gPool coarsening (binarize(A) @ binarize(A) != 0), row-tiled.

    TODO(synk): for very large N the resident (N,N) bf16 key operand is the VMEM
    ceiling; switch to key-chunked OR-accumulation when N*N*2 bytes nears budget.
    """
    n = adj_bf16.shape[0]
    if menu is None:
        menu = [t for t in _TILE_MENU if t <= n and n % t == 0] or [n]
    budget = _vmem_budget_bytes()
    tr = menu[-1]
    for t in menu:
        if 2 * (t * n * 2) + 2 * (n * n * 2) + 2 * (t * n * 4) + 2 * t * n * 4 <= budget:
            tr = t
            break
    nb = n // tr
    est = 2 * (tr * n * 2) + 2 * (n * n * 2) + 4 * tr * n * 3
    return pl.pallas_call(
        _coarsen_rows_kernel,
        out_shape=jax.ShapeDtypeStruct((n, n), jnp.float32),
        grid=(nb,),
        in_specs=[pl.BlockSpec((tr, n), lambda i: (i, 0)),
                  pl.BlockSpec((n, n), lambda i: (0, 0))],
        out_specs=pl.BlockSpec((tr, n), lambda i: (i, 0)),
        compiler_params=pltpu.CompilerParams(
            dimension_semantics=("parallel",),
            vmem_limit_bytes=_vmem_limit(est)),
        cost_estimate=pl.CostEstimate(flops=int(2 * n * n * n), transcendentals=0,
                                      bytes_accessed=int(2 * n * n * 2 + 4 * n * n)),
    )(adj_bf16, adj_bf16)


def linear_sigmoid(x, w, b):
    """y = sigmoid(x @ W + b), row-tiled for large N."""
    n, fin = x.shape
    fout = w.shape[1]
    tr = n
    if n > 2048:
        for t in (2048, 1024, 512, 256, 128, 8):
            if n % t == 0:
                tr = t
                break
    nb = n // tr
    # TODO(synk): pad fout up to 128 lanes to avoid masked vst.msk partial stores.
    return pl.pallas_call(
        _linear_sigmoid_kernel,
        out_shape=jax.ShapeDtypeStruct((n, fout), jnp.float32),
        grid=(nb,),
        in_specs=[pl.BlockSpec((tr, fin), lambda i: (i, 0)),
                  pl.BlockSpec((fin, fout), lambda i: (0, 0)),
                  pl.BlockSpec((1, fout), lambda i: (0, 0))],
        out_specs=pl.BlockSpec((tr, fout), lambda i: (i, 0)),
        compiler_params=pltpu.CompilerParams(
            dimension_semantics=("parallel",),
            vmem_limit_bytes=_vmem_limit(4 * (2 * tr * fin + fin * fout + fout + 2 * tr * fout))),
        cost_estimate=pl.CostEstimate(flops=int(2 * n * fin * fout),
                                      transcendentals=int(n * fout),
                                      bytes_accessed=int(4 * (n * fin + fin * fout + fout + n * fout))),
    )(x.astype(jnp.float32), w, b.reshape(1, -1))


# ----------------------------------------------------------------------------
# Graph U-Net glue (plain JAX; data-dependent index bookkeeping)
# ----------------------------------------------------------------------------
def recursive_index(indices_list):
    if len(indices_list) == 1:
        return indices_list[-1]
    return indices_list[0][recursive_index(indices_list[1:])]


def copy_adj(recon, adj, idx):
    return recon.at[idx[:, None], idx[None, :]].set(adj)


def norm_g(g):
    # eps guard against rows without self-loops (matches reference semantics otherwise)
    return g / jnp.maximum(jnp.sum(g, axis=1, keepdims=True), 1e-12)


def pool(un_g, h, scores, ratio=0.5):
    """gPool: keep top-k scored nodes, mask features, coarsen via A^2."""
    n = un_g.shape[0]
    k = max(2, int(ratio * n))
    values, idx = jax.lax.top_k(scores, k)
    new_h = h[idx, :] * values[:, None]
    sub = un_g[idx][:, idx]
    g = norm_g(sub)
    return g, new_h, idx, scores


def unpool(g, h, pre_h, idx):
    # TODO(synk): canonical Graph U-Net Unpool ignores pre_h (down_outs); kept unused.
    new_h = jnp.zeros((g.shape[0], h.shape[1]), h.dtype).at[idx].set(h)
    return g, new_h


def graph_unet_forward(params, x, adj):
    n_layer = params["n_layer"]
    gft_down_list, gft_up_list = [], []
    score_list, recon_adj_list = [], []
    adj_ms, indices_list, down_outs = [], [], []

    x, _, _, _ = gat_layer(params["start_gat"], x, adj)
    origin_size = (adj.shape[0], x.shape[1])

    for i in range(n_layer):
        # down-GAT with the gPool scoring head + A^2 coarsening fused in
        x, scores, _, un_g = gat_layer(params["down_gats"][i], x, adj,
                                       pool_params=params["pools"][i])
        adj_ms.append(adj)
        down_outs.append(x)
        adj, x, idx, scores = pool(un_g, x, scores[:, 0], ratio=0.5)
        indices_list.append(idx)

        org_idx = recursive_index(indices_list)
        full_x = jnp.zeros(origin_size, jnp.float32).at[org_idx].set(x)
        gft_down_list.append(full_x)

        recon_adj = copy_adj(jnp.zeros_like(adj_ms[0]), adj, org_idx)
        recon_adj_list.append(recon_adj)

        if i >= 1:
            pre_idx = recursive_index(indices_list[:-1])
            score_x = jnp.zeros((origin_size[0],), jnp.float32).at[pre_idx].set(scores)
            score_list.append(score_x[:, None])
        else:
            score_list.append(scores[:, None])

    x, _, _, _ = gat_layer(params["bottom_gat"], x, adj)

    att = None
    for i in range(n_layer):
        up_idx = n_layer - i - 1
        adj, idx = adj_ms[up_idx], indices_list[up_idx]
        adj, x = unpool(adj, x, down_outs[up_idx], idx)
        last = (i == n_layer - 1)
        # only the final up-GAT's attention map is ever returned -> only it is written
        x, _, att_i, _ = gat_layer(params["up_gats"][i], x, adj, return_att=last)
        if last:
            att = att_i
        if i < n_layer - 1:
            pre_idx = recursive_index(indices_list[:up_idx])
            new_x = jnp.zeros(origin_size, jnp.float32).at[pre_idx].set(x)
            gft_up_list.append(new_x)
        else:
            gft_up_list.append(x)

    x = linear_sigmoid(x, params["out_linear"]["W"], params["out_linear"]["b"])
    return x, gft_down_list, gft_up_list, att, score_list, recon_adj_list


# ----------------------------------------------------------------------------
# Deterministic parameter init + pure-JAX reference (for self-checking)
# ----------------------------------------------------------------------------
def init_gat(key, fin, fout, alpha):
    k1, k2 = jax.random.split(key)
    W = jax.random.normal(k1, (fin, fout), jnp.float32) / jnp.sqrt(jnp.float32(fin))
    a = jax.random.normal(k2, (2 * fout, 1), jnp.float32) * 0.1
    a2 = jnp.concatenate([a[:fout], a[fout:]], axis=1)   # (fout, 2) = [a_src | a_dst]
    return dict(W=W, a2=a2, alpha=alpha)


def init_linear(key, fin, fout):
    k1, k2 = jax.random.split(key)
    W = jax.random.normal(k1, (fin, fout), jnp.float32) / jnp.sqrt(jnp.float32(fin))
    b = jax.random.normal(k2, (fout,), jnp.float32) * 0.01
    return dict(W=W, b=b)


def init_graph_unet(key, nfeat, nhid, nclass, alpha, n_layer):
    keys = jax.random.split(key, 4 + 4 * n_layer)
    ki = iter(keys)
    return dict(
        n_layer=n_layer,
        start_gat=init_gat(next(ki), nfeat, nhid, alpha),
        bottom_gat=init_gat(next(ki), nhid, nhid, alpha),
        down_gats=[init_gat(next(ki), nhid, nhid, alpha) for _ in range(n_layer)],
        up_gats=[init_gat(next(ki), nhid, nhid, alpha) for _ in range(n_layer)],
        pools=[init_linear(next(ki), nhid, 1) for _ in range(n_layer)],
        out_linear=init_linear(next(ki), nhid, nclass),
    )


def _gat_reference(gp, x, adj, pool_params=None):
    """Plain-JAX GAT layer (used only to validate the blocked Pallas path)."""
    wh = x @ gp["W"]
    f = wh @ gp["a2"]
    e = f[:, 0:1] + f[:, 1:2].T
    e = jnp.where(e > 0, e, gp["alpha"] * e)
    logits = jnp.where(adj > 0, e, -9e15)
    att = jax.nn.softmax(logits, axis=-1)
    hp = att @ wh
    out = jnp.where(hp > 0, hp, jnp.exp(jnp.minimum(hp, 0.0)) - 1.0)
    score = None
    if pool_params is not None:
        score = jax.nn.sigmoid(out @ pool_params["W"] + pool_params["b"])
    return out, score, att


# ----------------------------------------------------------------------------
# Main
# ----------------------------------------------------------------------------
if __name__ == "__main__":
    N, nfeat, nhid, nclass, n_layer = 16, 8, 16, 4, 2
    alpha = 0.2

    key = jax.random.PRNGKey(0)
    k_adj, k_x, k_params, k_big = jax.random.split(key, 4)

    # symmetric binary adjacency with self loops
    a_rand = jax.random.uniform(k_adj, (N, N))
    adj = ((a_rand + a_rand.T) > 1.0).astype(jnp.float32)
    adj = ((adj + jnp.eye(N, dtype=jnp.float32)) > 0).astype(jnp.float32)
    x = jax.random.normal(k_x, (N, nfeat), jnp.float32)

    params = init_graph_unet(k_params, nfeat, nhid, nclass, alpha, n_layer)

    out = graph_unet_forward(params, x, adj)
    jax.block_until_ready(out)

    x_out, gft_down_list, gft_up_list, att, score_list, recon_adj_list = out
    assert x_out.shape == (N, nclass)
    assert att.shape == (N, N)
    assert len(gft_down_list) == n_layer and gft_down_list[0].shape == (N, nhid)
    assert len(score_list) == n_layer and score_list[0].shape == (N, 1)
    assert len(recon_adj_list) == n_layer and recon_adj_list[0].shape == (N, N)

    # --- exercise + validate the large-N blocked path (hoisted Wh precompute,
    #     online softmax over key blocks, bf16 adjacency, tiled coarsen) --------
    NB = 256
    kb1, kb2, kb3, kb4 = jax.random.split(k_big, 4)
    ab = jax.random.uniform(kb1, (NB, NB))
    adj_b = ((ab + ab.T) > 1.2).astype(jnp.float32)
    adj_b = ((adj_b + jnp.eye(NB, dtype=jnp.float32)) > 0).astype(jnp.float32)
    x_b = jax.random.normal(kb2, (NB, nhid), jnp.float32)
    gp_b = init_gat(kb3, nhid, nhid, alpha)
    pp_b = init_linear(kb4, nhid, 1)

    out_b, sc_b, _, ung_b = gat_layer(gp_b, x_b, adj_b, pool_params=pp_b,
                                      tile_q=128, tile_k=128)     # grid (2, 2)
    out_a, _, att_a, _ = gat_layer(gp_b, x_b, adj_b, return_att=True,
                                   tile_q=128)                    # grid (2, 1)
    jax.block_until_ready((out_b, sc_b, ung_b, out_a, att_a))

    ref_out, ref_sc, ref_att = _gat_reference(gp_b, x_b, adj_b, pp_b)
    u_ref = (adj_b > 0).astype(jnp.float32)
    ref_ung = (u_ref @ u_ref) > 0
    assert float(jnp.max(jnp.abs(out_b - ref_out))) < 7.5e-2
    assert float(jnp.max(jnp.abs(out_a - ref_out))) < 7.5e-2
    assert float(jnp.max(jnp.abs(sc_b - ref_sc))) < 5e-2
    assert float(jnp.max(jnp.abs(att_a - ref_att))) < 3e-2
    assert bool(jnp.all((ung_b > 0) == ref_ung))

    print("KERNEL_OK")
</pallas_src>

<mosaic_0001>
module attributes {stable_mosaic.version = 11 : i64} {
  func.func @_gat_fused_kernel(%arg0: memref<16x8xf32, #tpu.memory_space<vmem>>, %arg1: memref<16x16xbf16, #tpu.memory_space<vmem>>, %arg2: memref<8x16xf32, #tpu.memory_space<vmem>>, %arg3: memref<16x2xf32, #tpu.memory_space<vmem>>, %arg4: memref<16x16xf32, #tpu.memory_space<vmem>>) attributes {dimension_semantics = [], scalar_prefetch = 0 : i64, scratch_operands = 0 : i64, tpu.core_type = #tpu.core_type<tc>} {
    %c0 = arith.constant 0 : index
    %c0_0 = arith.constant 0 : index
    %0 = vector.load %arg0[%c0, %c0_0] : memref<16x8xf32, #tpu.memory_space<vmem>>, vector<16x8xf32>
    %c0_1 = arith.constant 0 : index
    %c0_2 = arith.constant 0 : index
    %1 = vector.load %arg2[%c0_1, %c0_2] : memref<8x16xf32, #tpu.memory_space<vmem>>, vector<8x16xf32>
    %cst = arith.constant dense<0.000000e+00> : vector<16x16xf32>
    %2 = tpu.matmul %0, %1, %cst {dimension_numbers = #tpu.dot_dimension_numbers<[1], [0], [0], [1], [0, 0, 1, 1], [], []>} : vector<16x8xf32>, vector<8x16xf32>, vector<16x16xf32> -> vector<16x16xf32>
    %c0_3 = arith.constant 0 : index
    %c0_4 = arith.constant 0 : index
    %3 = vector.load %arg3[%c0_3, %c0_4] : memref<16x2xf32, #tpu.memory_space<vmem>>, vector<16x2xf32>
    %cst_5 = arith.constant dense<0.000000e+00> : vector<16x2xf32>
    %4 = tpu.matmul %2, %3, %cst_5 {dimension_numbers = #tpu.dot_dimension_numbers<[1], [0], [0], [1], [0, 0, 1, 1], [], []>} : vector<16x16xf32>, vector<16x2xf32>, vector<16x2xf32> -> vector<16x2xf32>
    %5 = vector.extract_strided_slice %4 {offsets = [0, 0], sizes = [16, 1], strides = [1, 1]} : vector<16x2xf32> to vector<16x1xf32>
    %6 = vector.extract_strided_slice %4 {offsets = [0, 1], sizes = [16, 1], strides = [1, 1]} : vector<16x2xf32> to vector<16x1xf32>
    %7 = tpu.transpose %6, [1, 0] : vector<16x1xf32> -> vector<1x16xf32>
    %8 = vector.broadcast %5 : vector<16x1xf32> to vector<16x16xf32>
    %9 = vector.broadcast %7 : vector<1x16xf32> to vector<16x16xf32>
    %10 = arith.addf %8, %9 : vector<16x16xf32>
    %cst_6 = arith.constant 0.000000e+00 : f32
    %11 = vector.broadcast %cst_6 : f32 to vector<16x16xf32>
    %12 = arith.cmpf ogt, %10, %11 : vector<16x16xf32>
    %cst_7 = arith.constant 2.000000e-01 : f32
    %13 = vector.broadcast %cst_7 : f32 to vector<16x16xf32>
    %14 = arith.mulf %13, %10 : vector<16x16xf32>
    %15 = arith.select %12, %10, %14 : vector<16x16xi1>, vector<16x16xf32>
    %c0_8 = arith.constant 0 : index
    %c0_9 = arith.constant 0 : index
    %16 = vector.load %arg1[%c0_8, %c0_9] : memref<16x16xbf16, #tpu.memory_space<vmem>>, vector<16x16xbf16>
    %cst_10 = arith.constant 0.000000e+00 : bf16
    %17 = vector.broadcast %cst_10 : bf16 to vector<16x16xbf16>
    %18 = arith.cmpf ogt, %16, %17 : vector<16x16xbf16>
    %cst_11 = arith.constant -9.000000e+15 : f32
    %19 = vector.broadcast %cst_11 : f32 to vector<16x16xf32>
    %20 = arith.select %18, %15, %19 : vector<16x16xi1>, vector<16x16xf32>
    %cst_12 = arith.constant dense<0xFF800000> : vector<16xf32>
    %21 = vector.multi_reduction <maximumf>, %20, %cst_12 [1] : vector<16x16xf32> to vector<16xf32>
    %22 = vector.shape_cast %21 : vector<16xf32> to vector<16x1xf32>
    %23 = vector.broadcast %22 : vector<16x1xf32> to vector<16x16xf32>
    %24 = arith.subf %20, %23 : vector<16x16xf32>
    %25 = math.exp %24 : vector<16x16xf32>
    %cst_13 = arith.constant dense<0.000000e+00> : vector<16xf32>
    %26 = vector.multi_reduction <add>, %25, %cst_13 [1] : vector<16x16xf32> to vector<16xf32>
    %27 = vector.shape_cast %26 : vector<16xf32> to vector<16x1xf32>
    %28 = tpu.reciprocal %27 {approx = true} : vector<16x1xf32> -> vector<16x1xf32>
    %29 = vector.broadcast %28 : vector<16x1xf32> to vector<16x16xf32>
    %30 = arith.mulf %25, %29 : vector<16x16xf32>
    %31 = arith.truncf %30 : vector<16x16xf32> to vector<16x16xbf16>
    %32 = arith.truncf %2 : vector<16x16xf32> to vector<16x16xbf16>
    %cst_14 = arith.constant dense<0.000000e+00> : vector<16x16xf32>
    %33 = tpu.matmul %31, %32, %cst_14 {dimension_numbers = #tpu.dot_dimension_numbers<[1], [0], [0], [1], [0, 0, 1, 1], [], []>} : vector<16x16xbf16>, vector<16x16xbf16>, vector<16x16xf32> -> vector<16x16xf32>
    %cst_15 = arith.constant 0.000000e+00 : f32
    %34 = vector.broadcast %cst_15 : f32 to vector<16x16xf32>
    %35 = arith.cmpf ogt, %33, %34 : vector<16x16xf32>
    %cst_16 = arith.constant 0.000000e+00 : f32
    %36 = vector.broadcast %cst_16 : f32 to vector<16x16xf32>
    %37 = arith.minimumf %33, %36 : vector<16x16xf32>
    %38 = math.exp %37 : vector<16x16xf32>
    %cst_17 = arith.constant 1.000000e+00 : f32
    %39 = vector.broadcast %cst_17 : f32 to vector<16x16xf32>
    %40 = arith.subf %38, %39 : vector<16x16xf32>
    %41 = arith.select %35, %33, %40 : vector<16x16xi1>, vector<16x16xf32>
    %c0_18 = arith.constant 0 : index
    %c0_19 = arith.constant 0 : index
    %42 = vector.load %arg4[%c0_18, %c0_19] : memref<16x16xf32, #tpu.memory_space<vmem>>, vector<16x16xf32>
    tpu.vector_store %arg4[%c0_18, %c0_19], %41 {strides = array<i32>} : memref<16x16xf32, #tpu.memory_space<vmem>>, vector<16x16xf32>,
    return
  }
}

</mosaic_0001>

<bundles_post_ra>
// kernel: tpu_custom_call.1
= control target key start
LH: loop header
LB: loop body
LE: loop exit
PB: predicated region body
PF: predicated region fallthrough
CT: control target
= control target key end

     0   :  { %vm22_vm0 = vcmask 64512   ;;  %s341_s0 = inlined_call_operand.vmem [shape: f32[16,8], index: 0, kind: input, shape index: {}]   ;;  %s342_s1 = inlined_call_operand.vmem [shape: bf16[16,16], index: 1, kind: input, shape index: {}]   ;;  %s343_s2 = inlined_call_operand.vmem [shape: f32[8,16], index: 2, kind: input, shape index: {}]   ;;  %s344_s3 = inlined_call_operand.vmem [shape: f32[16,2], index: 3, kind: input, shape index: {}]   ;;  %s345_s4 = inlined_call_operand.hbm [shape: f32[16,16], index: 4, kind: output, shape index: {}]  }
   0x1   :  { %v21_v0 = vld [vmem:[%s343_s2] sm:$0xff]  ;;  %v53_v2 = vld [vmem:[%s344_s3 + $0x8] sm:$0xff] }
   0x2   :  { %v19_v1 = vld [vmem:[%s341_s0] sm:$0xff]  ;;  %44 = vmatpush.msra.mxu0 %v21_v0 }
   0x3   :  { %9 = vsyncpa [#allocation3], 0  ;;  %222 = vmatmul.msk.f32.vlgmr.msra.gmra.mxu0 %vm22_vm0, %v19_v1  ;;  %75 = vmatpush.msra.mxu1 %v53_v2  ;;  %v20_v3 = vld [vmem:[%s341_s0 + $0x8] sm:$0xff]  ;;  %v52_v4 = vld [vmem:[%s344_s3] sm:$0xff]  ;;  %v281_v5 = vmov 0   ;;  %vm54_vm1 = vcmask 130048  }
   0x4   :  { %233 = vmatpush.msra.mxu3 %v53_v2  ;;  %241 = vset.pattern.permute.xlu1 %v281_v5  ;;  %s282_s0 = smov 127   ;;  %v230_v14 = vld [vmem:[%s342_s1] sm:$0xff]   ;;  %s283_s1 = smov [#allocation2]  }
   0x5   :  { %76 = vmatpush.msra.mxu1 %v52_v4  ;;  %242 = vset.pattern.permute.xlu0 %v281_v5  ;;  %v232_v16 = vunpack.c.h.bf16 %v230_v14  ;;  %v231_v17 = vunpack.c.l.bf16 %v230_v14  ;;  %s208_s25 = sshll.u32 %s283_s1, 4  ;;  %s210_s28 = sshll.u32 %s345_s4, 4  ;;  %s209_s25 = int_to_ptr.vmem [resolvable:$true] %s208_s25  ;;  %s211_s28 = int_to_ptr.hbm [resolvable:$true] %s210_s28 }
   0x6   :  { %234 = vmatpush.msra.mxu3 %v52_v4  ;;  %s284_s29 = smov 128   ;;  %s285_s30 = smov 8  }
   0x7   :  { %vm146_vm2 = vcmp.gt.f32.partialorder %v232_v16, 0.0  ;;  %vm145_vm3 = vcmp.gt.f32.partialorder %v231_v17, 0.0 }
   0xb   :  { %223 = vmatmul.msk.f32.gmra.mxu0 %vm22_vm0, %v20_v3 }
  0x80   :  { %v46_v6 = vpop.f32.mrf.mxu0 }
  0x81   :  { %224 = vmatmul.msk.f32.vlgmr.msra.gmra.mxu1 %vm54_vm1, %v46_v6 }
  0x88   :  { %v49_v7 = vpop.f32.mrf.mxu0 }
  0x89   :  { %225 = vmatmul.msk.f32.vlgmr.msra.gmra.mxu3 %vm54_vm1, %v49_v7  ;;  %v172_v8 = vpack.c.bf16 %v49_v7, %v46_v6 }
  0x8b   :  { %183 = vmatpush.bf16.msra.mxu2 %v172_v8 }
  0xfe   :  { %v78_v9 = vpop.f32.mrf.mxu1 }
  0xff   :  { %125 = vperm.xlu1 %241, %v78_v9   ;;  %86 = vrot.lane.b32.xlu0 %v78_v9, %s282_s0 }
 0x10c   :  { %v81_v10 = vpop.f32.mrf.mxu3 }
 0x10d   :  { %129 = vperm.xlu1 %241, %v81_v10   ;;  %88 = vrot.lane.b32.xlu0 %v81_v10, %s282_s0 }
 0x171   :  { %v87_v11 = vpop.permute.xlu0 %86  ;;  %v126_v13 = vpop.permute.xlu1 %125 }
 0x172   :  { %92 = vxpose.xlu2.b32.start [1/2] (short) (narrow) %v87_v11, 8 }
 0x17f   :  { %v89_v12 = vpop.permute.xlu0 %88  ;;  %v130_v19 = vpop.permute.xlu1 %129 }
 0x180   :  { %93 = vxpose.xlu2.b32.end [2/2] (short) (narrow) %v89_v12, 8 }
 0x211   :  { %v108_v15 = vpop.trf.xlu2 }
 0x212   :  { %v132_v18 = vperm.slane %v108_v15, 0 }
 0x214   :  { %v133_v20 = vadd.f32 %v132_v18, %v126_v13  ;;  %v134_v21 = vadd.f32 %v132_v18, %v130_v19 }
 0x216   :  { %vm136_vm4 = vcmp.gt.f32.partialorder %v134_v21, 0.0  ;;  %v138_v22 = vmul.f32 0.2, %v134_v21  ;;  %vm135_vm5 = vcmp.gt.f32.partialorder %v133_v20, 0.0  ;;  %v137_v23 = vmul.f32 0.2, %v133_v20 }
 0x218   :  { %v140_v24 = vsel %vm136_vm4, %v134_v21, %v138_v22  ;;  %v139_v25 = vsel %vm135_vm5, %v133_v20, %v137_v23 }
 0x219   :  { %v148_v26 = vsel %vm146_vm2, %v140_v24, -9e+15  ;;  %v147_v27 = vsel %vm145_vm3, %v139_v25, -9e+15 }
 0x21a   :  { %v152_v28 = vsel %vm54_vm1, %v148_v26, -inf  ;;  %v149_v29 = vsel %vm54_vm1, %v147_v27, -inf }
 0x21b   :  { %153 = vmax.xlane.f32.xlu1 %v152_v28  ;;  %150 = vmax.xlane.f32.xlu0 %v149_v29 }
 0x28e   :  { %v154_v30 = vpop.xlane.xlu1 %153  ;;  %v151_v31 = vpop.xlane.xlu0 %150 }
 0x28f   :  { %v156_v32 = vsub.f32 %v148_v26, %v154_v30  ;;  %v155_v33 = vsub.f32 %v147_v27, %v151_v31 }
 0x291   :  { %v159_v34 = vmul.f32 1.442695, %v156_v32  ;;  %v157_v35 = vmul.f32 1.442695, %v155_v33 }
 0x293   :  { %243 = vpow2.f32 %v159_v34 }
 0x294   :  { %245 = vpow2.f32 %v157_v35 }
 0x299   :  { %v244_v36 = vpop.eup %243 }
 0x29a   :  { %v246_v37 = vpop.eup %245  ;;  %v164_v38 = vsel %vm54_vm1, %v244_v36, 0.0 }
 0x29b   :  { %165 = vadd.xlane.f32.xlu0 %v164_v38  ;;  %v161_v39 = vsel %vm54_vm1, %v246_v37, 0.0 }
 0x29c   :  { %162 = vadd.xlane.f32.xlu2 %v161_v39 }
 0x30e   :  { %v166_v40 = vpop.xlane.xlu0 %165 }
 0x30f   :  { %v163_v41 = vpop.xlane.xlu2 %162  ;;  %247 = vrcp.f32 %v166_v40 }
 0x310   :  { %249 = vrcp.f32 %v163_v41 }
 0x315   :  { %v248_v42 = vpop.eup %247 }
 0x316   :  { %v250_v43 = vpop.eup %249  ;;  %v170_v44 = vmul.f32 %v248_v42, %v244_v36 }
 0x317   :  { %v169_v45 = vmul.f32 %v250_v43, %v246_v37 }
 0x319   :  { %v171_v46 = vpack.c.bf16 %v170_v44, %v169_v45 }
 0x31b   :  { %226 = vmatmul.msk.bf16.vlgmr.msra.gmra.mxu2 %vm54_vm1, %v171_v46 }
 0x39e   :  { %v185_v47 = vpop.f32.mrf.mxu2 }
 0x39f   :  { %v192_v48 = vmin.f32 %v185_v47, 0.0  ;;  %vm190_vm6 = vcmp.gt.f32.partialorder %v185_v47, 0.0 }
 0x3a1   :  { %v194_v49 = vmul.f32 1.442695, %v192_v48 }
 0x3a3   :  { %251 = vpow2.f32 %v194_v49 }
 0x3a6   :  { %v187_v50 = vpop.f32.mrf.mxu2 }
 0x3a7   :  { %v193_v51 = vmin.f32 %v187_v50, 0.0  ;;  %vm191_vm7 = vcmp.gt.f32.partialorder %v187_v50, 0.0 }
 0x3a9   :  { %v252_v52 = vpop.eup %251  ;;  %v196_v53 = vmul.f32 1.442695, %v193_v51 }
 0x3aa   :  { %v227_v54 = vadd.f32 -1.0, %v252_v52 }
 0x3ab   :  { %253 = vpow2.f32 %v196_v53 }
 0x3ac   :  { %v200_v55 = vsel %vm190_vm6, %v185_v47, %v227_v54 }
 0x3ad   :  { %202 = vst.msk [vmem:[#allocation2] sm:$0xff] %vm54_vm1, %v200_v55 }
 0x3b1   :  { %v254_v56 = vpop.eup %253 }
 0x3b2   :  { %v228_v57 = vadd.f32 -1.0, %v254_v56 }
 0x3b4   :  { %v201_v58 = vsel %vm191_vm7, %v187_v50, %v228_v57 }
 0x3b5   :  { %203 = vst.msk [vmem:[#allocation2 + $0x8] sm:$0xff] %vm54_vm1, %v201_v58 }
 0x3b6   :  { %216 = dma.vmem_to_hbm [thread:$0]  %s209_s25, 256, %s211_s28, [#allocation3], %s284_s29, %s284_s29, %s285_s30  }
 0x3b7   :  { %279 = dma.done.wait [#allocation3], 256  }
 0x3b8   :  { %280 = vsyncadd [#allocation3], 4294967040 }
 0x3b9   :  { %221 = vsyncpa [#allocation3], 1 }

</bundles_post_ra>
